<compile_context>
chip_gen: v7x
topology: tpu7x:2x2x1
jax: 0.10.0
libtpu: 0.0.40
codegen_flags: <defaults>
</compile_context>

<pallas_src>
import functools
import math

import jax
import jax.numpy as jnp
from jax.experimental import pallas as pl
from jax.experimental.pallas import tpu as pltpu


def _round_up(v: int, m: int) -> int:
    return (v + m - 1) // m * m


def _quadratic_kernel(x_ref, wrg_ref, wb_ref, brg_ref, bb_ref, o_ref, *, out_p):
    """One batch tile of:  (x@Wr+br) * (x@Wg+bg) + (x*x)@Wb + bb."""
    x = x_ref[...]

    # Fused r|g projection: ONE wide MXU pass over the concatenated [Wr | Wg]
    # (2*out_p lanes) instead of two narrow passes. f32 accumulation.
    rg = jnp.dot(x, wrg_ref[...], preferred_element_type=jnp.float32) + brg_ref[...]
    r = rg[:, :out_p]          # static, lane-aligned split (out_p % 128 == 0)
    g = rg[:, out_p:]

    # Quadratic term: (x*x) @ Wb  (second MXU pass).
    q = jnp.dot(x * x, wb_ref[...], preferred_element_type=jnp.float32) + bb_ref[...]

    o_ref[...] = (r * g + q).astype(o_ref.dtype)


@functools.partial(jax.jit, static_argnames=("tile_n", "single_buffer_weights"))
def _quadratic_impl(x, wrg, wb, brg, bb, *, tile_n, single_buffer_weights):
    n_p, k = x.shape
    two_out_p = wrg.shape[1]
    out_p = two_out_p // 2
    grid = (n_p // tile_n,)

    def invariant_spec(shape):
        # Grid-invariant blocks (weights / biases): index_map is constant, so
        # single-buffering them halves their VMEM footprint.
        if single_buffer_weights:
            return pl.BlockSpec(shape, lambda i: (0, 0),
                                pipeline_mode=pl.Buffered(1))
        return pl.BlockSpec(shape, lambda i: (0, 0))

    # Rough VMEM budget (weights + double-buffered x/out tiles + f32 temporaries),
    # used to raise the scoped VMEM limit above the 16/32 MiB defaults while
    # staying under the 64 MiB physical VMEM of v7x.
    w_bufs = 1 if single_buffer_weights else 2
    est = (w_bufs * (wrg.size * wrg.dtype.itemsize + wb.size * wb.dtype.itemsize)
           + 2 * tile_n * k * x.dtype.itemsize
           + 2 * tile_n * out_p * 4
           + (brg.size + bb.size) * 4
           + tile_n * (two_out_p + out_p) * 4)
    vmem_limit = int(min(max(2 * est, 32 * 1024 * 1024), 64 * 1024 * 1024))

    # NOTE: at these layer sizes all weights fit in VMEM; for very large
    # in_features/out_features a K/N grid axis with an f32 accumulator would be
    # added here (r*g only applied in the k==last epilogue).
    kernel = functools.partial(_quadratic_kernel, out_p=out_p)
    return pl.pallas_call(
        kernel,
        out_shape=jax.ShapeDtypeStruct((n_p, out_p), jnp.float32),
        grid=grid,
        in_specs=[
            pl.BlockSpec((tile_n, k), lambda i: (i, 0)),   # x tile (rows)
            invariant_spec((k, two_out_p)),                # [Wr | Wg]
            invariant_spec((k, out_p)),                    # Wb
            invariant_spec((1, two_out_p)),                # [br | bg]
            invariant_spec((1, out_p)),                    # bb
        ],
        out_specs=pl.BlockSpec((tile_n, out_p), lambda i: (i, 0)),
        compiler_params=pltpu.CompilerParams(
            dimension_semantics=("parallel",),             # megacore-splittable
            vmem_limit_bytes=vmem_limit,
        ),
    )(x, wrg, wb, brg, bb)


def quadratic_operation(x, weight_r, weight_g, weight_b,
                        bias_r, bias_g, bias_b, *, tile_n=256, compute_dtype=None):
    """Forward pass of Q-GAT QuadraticOperation.

    out = (x @ Wr + br) * (x @ Wg + bg) + (x*x) @ Wb + bb

    compute_dtype=jnp.bfloat16 can be passed on v6e/v7x for ~2x MXU rate
    (f32 accumulation is kept inside the kernel).
    """
    n, in_features = x.shape
    out_features = weight_r.shape[1]
    out_dtype = x.dtype

    if compute_dtype is not None:
        x = x.astype(compute_dtype)
        weight_r = weight_r.astype(compute_dtype)
        weight_g = weight_g.astype(compute_dtype)
        weight_b = weight_b.astype(compute_dtype)

    # ---- lane-dense feature axis: pad out_features up to a multiple of 128 ----
    out_p = _round_up(out_features, 128)
    pad_o = out_p - out_features

    def pad_w(w):
        return jnp.pad(w, ((0, 0), (0, pad_o))) if pad_o else w

    def pad_b(b):
        b = b.reshape(1, out_features).astype(jnp.float32)
        return jnp.pad(b, ((0, 0), (0, pad_o))) if pad_o else b

    # Fuse the r and g projections into one wide MXU pass.
    wrg = jnp.concatenate([pad_w(weight_r), pad_w(weight_g)], axis=1)
    wb = pad_w(weight_b)
    brg = jnp.concatenate([pad_b(bias_r), pad_b(bias_g)], axis=1)
    bb = pad_b(bias_b)

    # ---- batch tiling: big tiles (multiple of 8 sublanes), padded tail ----
    tile_n = max(8, _round_up(min(tile_n, n), 8))
    n_p = _round_up(n, tile_n)
    if n_p != n:
        x = jnp.pad(x, ((0, n_p - n), (0, 0)))

    try:
        out = _quadratic_impl(x, wrg, wb, brg, bb,
                              tile_n=tile_n, single_buffer_weights=True)
    except Exception:
        # Graceful fallback if this JAX build rejects single-buffered
        # (pipeline_mode=pl.Buffered(1)) grid-invariant blocks.
        out = _quadratic_impl(x, wrg, wb, brg, bb,
                              tile_n=tile_n, single_buffer_weights=False)

    return out[:n, :out_features].astype(out_dtype)


def init_quadratic_params(key, in_features, out_features, dtype=jnp.float32):
    """Re-implementation of the module's __init__ / reset_parameters.

    PyTorch's _calculate_fan_in_and_fan_out on the (in_features, out_features)
    weight tensor uses size(1) as fan_in, i.e. fan_in = out_features here
    (this mirrors the reference module exactly, even though it is unusual).
    """
    k_wr, k_br = jax.random.split(key)
    fan_in = out_features
    a = math.sqrt(5.0)
    gain = math.sqrt(2.0 / (1.0 + a * a))
    bound_w = gain * math.sqrt(3.0 / fan_in)
    weight_r = jax.random.uniform(k_wr, (in_features, out_features), dtype,
                                  minval=-bound_w, maxval=bound_w)
    weight_g = jnp.zeros((in_features, out_features), dtype)
    weight_b = jnp.zeros((in_features, out_features), dtype)
    bound_b = 1.0 / math.sqrt(fan_in)
    bias_r = jax.random.uniform(k_br, (out_features,), dtype,
                                minval=-bound_b, maxval=bound_b)
    bias_g = jnp.ones((out_features,), dtype)
    bias_b = jnp.zeros((out_features,), dtype)
    return weight_r, weight_g, weight_b, bias_r, bias_g, bias_b


def _reference(x, wr, wg, wb, br, bg, bb):
    return (x @ wr + br) * (x @ wg + bg) + (x * x) @ wb + bb


if __name__ == "__main__":
    key = jax.random.PRNGKey(0)
    k_x, k_wr, k_wg, k_wb, k_br, k_bg, k_bb = jax.random.split(key, 7)

    # Deliberately "ragged" small shapes to exercise batch-tail and lane padding.
    N, IN_F, OUT_F = 13, 24, 48
    x = jax.random.normal(k_x, (N, IN_F), jnp.float32)

    weight_r = 0.2 * jax.random.normal(k_wr, (IN_F, OUT_F), jnp.float32)
    weight_g = 0.2 * jax.random.normal(k_wg, (IN_F, OUT_F), jnp.float32)
    weight_b = 0.2 * jax.random.normal(k_wb, (IN_F, OUT_F), jnp.float32)
    bias_r = jax.random.normal(k_br, (OUT_F,), jnp.float32)
    bias_g = jax.random.normal(k_bg, (OUT_F,), jnp.float32)
    bias_b = jax.random.normal(k_bb, (OUT_F,), jnp.float32)

    # 1) fully-random parameters (exercises every term of the quadratic op).
    out = jax.block_until_ready(
        quadratic_operation(x, weight_r, weight_g, weight_b,
                            bias_r, bias_g, bias_b))
    ref = _reference(x, weight_r, weight_g, weight_b, bias_r, bias_g, bias_b)
    assert out.shape == (N, OUT_F)
    assert jnp.allclose(out, ref, atol=1e-4, rtol=1e-4), \
        float(jnp.max(jnp.abs(out - ref)))

    # 2) parameters from the module's actual initialization.
    params = init_quadratic_params(jax.random.PRNGKey(1), IN_F, OUT_F)
    out2 = jax.block_until_ready(quadratic_operation(x, *params))
    assert jnp.allclose(out2, _reference(x, *params), atol=1e-4, rtol=1e-4)

    # 3) multi-tile grid path (several batch tiles) at small scale.
    x3 = jax.random.normal(jax.random.PRNGKey(2), (40, IN_F), jnp.float32)
    out3 = jax.block_until_ready(
        quadratic_operation(x3, weight_r, weight_g, weight_b,
                            bias_r, bias_g, bias_b, tile_n=8))
    assert jnp.allclose(out3,
                        _reference(x3, weight_r, weight_g, weight_b,
                                   bias_r, bias_g, bias_b),
                        atol=1e-4, rtol=1e-4)

    print("KERNEL_OK")
</pallas_src>

<mosaic_0001>
module attributes {stable_mosaic.version = 11 : i64} {
  func.func @_quadratic_kernel(%arg0: i32, %arg1: memref<16x24xf32, #tpu.memory_space<vmem>>, %arg2: memref<24x256xf32, #tpu.memory_space<vmem>>, %arg3: memref<24x128xf32, #tpu.memory_space<vmem>>, %arg4: memref<1x256xf32, #tpu.memory_space<vmem>>, %arg5: memref<1x128xf32, #tpu.memory_space<vmem>>, %arg6: memref<16x128xf32, #tpu.memory_space<vmem>>) attributes {dimension_semantics = [#tpu.dimension_semantics<parallel>], iteration_bounds = array<i64: 1>, scalar_prefetch = 0 : i64, scratch_operands = 0 : i64, tpu.core_type = #tpu.core_type<tc>, window_params = [{transform_indices = @transform_0, window_bounds = array<i64: 16, 24>}, {pipeline_mode = #tpu.pipeline_mode<synchronous>, transform_indices = @transform_1, window_bounds = array<i64: 24, 256>}, {pipeline_mode = #tpu.pipeline_mode<synchronous>, transform_indices = @transform_2, window_bounds = array<i64: 24, 128>}, {pipeline_mode = #tpu.pipeline_mode<synchronous>, transform_indices = @transform_3, window_bounds = array<i64: 1, 256>}, {pipeline_mode = #tpu.pipeline_mode<synchronous>, transform_indices = @transform_4, window_bounds = array<i64: 1, 128>}, {transform_indices = @transform_5, window_bounds = array<i64: 16, 128>}]} {
    %c0 = arith.constant 0 : index
    %c0_0 = arith.constant 0 : index
    %0 = vector.load %arg1[%c0, %c0_0] : memref<16x24xf32, #tpu.memory_space<vmem>>, vector<16x24xf32>
    %c0_1 = arith.constant 0 : index
    %c0_2 = arith.constant 0 : index
    %1 = vector.load %arg2[%c0_1, %c0_2] : memref<24x256xf32, #tpu.memory_space<vmem>>, vector<24x256xf32>
    %cst = arith.constant dense<0.000000e+00> : vector<16x256xf32>
    %2 = tpu.matmul %0, %1, %cst {dimension_numbers = #tpu.dot_dimension_numbers<[1], [0], [0], [1], [0, 0, 1, 1], [], []>} : vector<16x24xf32>, vector<24x256xf32>, vector<16x256xf32> -> vector<16x256xf32>
    %c0_3 = arith.constant 0 : index
    %c0_4 = arith.constant 0 : index
    %3 = vector.load %arg4[%c0_3, %c0_4] : memref<1x256xf32, #tpu.memory_space<vmem>>, vector<1x256xf32>
    %4 = vector.broadcast %3 : vector<1x256xf32> to vector<16x256xf32>
    %5 = arith.addf %2, %4 : vector<16x256xf32>
    %6 = vector.extract_strided_slice %5 {offsets = [0, 0], sizes = [16, 128], strides = [1, 1]} : vector<16x256xf32> to vector<16x128xf32>
    %7 = vector.extract_strided_slice %5 {offsets = [0, 128], sizes = [16, 128], strides = [1, 1]} : vector<16x256xf32> to vector<16x128xf32>
    %8 = arith.mulf %0, %0 : vector<16x24xf32>
    %c0_5 = arith.constant 0 : index
    %c0_6 = arith.constant 0 : index
    %9 = vector.load %arg3[%c0_5, %c0_6] : memref<24x128xf32, #tpu.memory_space<vmem>>, vector<24x128xf32>
    %cst_7 = arith.constant dense<0.000000e+00> : vector<16x128xf32>
    %10 = tpu.matmul %8, %9, %cst_7 {dimension_numbers = #tpu.dot_dimension_numbers<[1], [0], [0], [1], [0, 0, 1, 1], [], []>} : vector<16x24xf32>, vector<24x128xf32>, vector<16x128xf32> -> vector<16x128xf32>
    %c0_8 = arith.constant 0 : index
    %c0_9 = arith.constant 0 : index
    %11 = vector.load %arg5[%c0_8, %c0_9] : memref<1x128xf32, #tpu.memory_space<vmem>>, vector<1x128xf32>
    %12 = vector.broadcast %11 : vector<1x128xf32> to vector<16x128xf32>
    %13 = arith.addf %10, %12 : vector<16x128xf32>
    %14 = arith.mulf %6, %7 : vector<16x128xf32>
    %15 = arith.addf %14, %13 : vector<16x128xf32>
    %c0_10 = arith.constant 0 : index
    %c0_11 = arith.constant 0 : index
    %16 = vector.load %arg6[%c0_10, %c0_11] : memref<16x128xf32, #tpu.memory_space<vmem>>, vector<16x128xf32>
    tpu.vector_store %arg6[%c0_10, %c0_11], %15 {strides = array<i32>} : memref<16x128xf32, #tpu.memory_space<vmem>>, vector<16x128xf32>,
    return
  }
  func.func @transform_0(%arg0: i32) -> (i32, i32) {
    %c0_i32 = arith.constant 0 : i32
    %c0_i32_0 = arith.constant 0 : i32
    return %arg0, %c0_i32 : i32, i32
  }
  func.func @transform_1(%arg0: i32) -> (i32, i32) {
    %c0_i32 = arith.constant 0 : i32
    %c0_i32_0 = arith.constant 0 : i32
    %c0_i32_1 = arith.constant 0 : i32
    return %c0_i32, %c0_i32_0 : i32, i32
  }
  func.func @transform_2(%arg0: i32) -> (i32, i32) {
    %c0_i32 = arith.constant 0 : i32
    %c0_i32_0 = arith.constant 0 : i32
    %c0_i32_1 = arith.constant 0 : i32
    return %c0_i32, %c0_i32_0 : i32, i32
  }
  func.func @transform_3(%arg0: i32) -> (i32, i32) {
    %c0_i32 = arith.constant 0 : i32
    %c0_i32_0 = arith.constant 0 : i32
    %c0_i32_1 = arith.constant 0 : i32
    return %c0_i32, %c0_i32_0 : i32, i32
  }
  func.func @transform_4(%arg0: i32) -> (i32, i32) {
    %c0_i32 = arith.constant 0 : i32
    %c0_i32_0 = arith.constant 0 : i32
    %c0_i32_1 = arith.constant 0 : i32
    return %c0_i32, %c0_i32_0 : i32, i32
  }
  func.func @transform_5(%arg0: i32) -> (i32, i32) {
    %c0_i32 = arith.constant 0 : i32
    %c0_i32_0 = arith.constant 0 : i32
    return %arg0, %c0_i32 : i32, i32
  }
}

module attributes {stable_mosaic.version = 11 : i64} {
  func.func @_quadratic_kernel(%arg0: i32, %arg1: memref<16x24xf32, #tpu.memory_space<vmem>>, %arg2: memref<24x256xf32, #tpu.memory_space<vmem>>, %arg3: memref<24x128xf32, #tpu.memory_space<vmem>>, %arg4: memref<1x256xf32, #tpu.memory_space<vmem>>, %arg5: memref<1x128xf32, #tpu.memory_space<vmem>>, %arg6: memref<16x128xf32, #tpu.memory_space<vmem>>) attributes {dimension_semantics = [#tpu.dimension_semantics<parallel>], iteration_bounds = array<i64: 1>, scalar_prefetch = 0 : i64, scratch_operands = 0 : i64, tpu.core_type = #tpu.core_type<tc>, window_params = [{transform_indices = @transform_0, window_bounds = array<i64: 16, 24>}, {pipeline_mode = #tpu.pipeline_mode<synchronous>, transform_indices = @transform_1, window_bounds = array<i64: 24, 256>}, {pipeline_mode = #tpu.pipeline_mode<synchronous>, transform_indices = @transform_2, window_bounds = array<i64: 24, 128>}, {pipeline_mode = #tpu.pipeline_mode<synchronous>, transform_indices = @transform_3, window_bounds = array<i64: 1, 256>}, {pipeline_mode = #tpu.pipeline_mode<synchronous>, transform_indices = @transform_4, window_bounds = array<i64: 1, 128>}, {transform_indices = @transform_5, window_bounds = array<i64: 16, 128>}]} {
    %c0 = arith.constant 0 : index
    %c0_0 = arith.constant 0 : index
    %0 = vector.load %arg1[%c0, %c0_0] : memref<16x24xf32, #tpu.memory_space<vmem>>, vector<16x24xf32>
    %c0_1 = arith.constant 0 : index
    %c0_2 = arith.constant 0 : index
    %1 = vector.load %arg2[%c0_1, %c0_2] : memref<24x256xf32, #tpu.memory_space<vmem>>, vector<24x256xf32>
    %cst = arith.constant dense<0.000000e+00> : vector<16x256xf32>
    %2 = tpu.matmul %0, %1, %cst {dimension_numbers = #tpu.dot_dimension_numbers<[1], [0], [0], [1], [0, 0, 1, 1], [], []>} : vector<16x24xf32>, vector<24x256xf32>, vector<16x256xf32> -> vector<16x256xf32>
    %c0_3 = arith.constant 0 : index
    %c0_4 = arith.constant 0 : index
    %3 = vector.load %arg4[%c0_3, %c0_4] : memref<1x256xf32, #tpu.memory_space<vmem>>, vector<1x256xf32>
    %4 = vector.broadcast %3 : vector<1x256xf32> to vector<16x256xf32>
    %5 = arith.addf %2, %4 : vector<16x256xf32>
    %6 = vector.extract_strided_slice %5 {offsets = [0, 0], sizes = [16, 128], strides = [1, 1]} : vector<16x256xf32> to vector<16x128xf32>
    %7 = vector.extract_strided_slice %5 {offsets = [0, 128], sizes = [16, 128], strides = [1, 1]} : vector<16x256xf32> to vector<16x128xf32>
    %8 = arith.mulf %0, %0 : vector<16x24xf32>
    %c0_5 = arith.constant 0 : index
    %c0_6 = arith.constant 0 : index
    %9 = vector.load %arg3[%c0_5, %c0_6] : memref<24x128xf32, #tpu.memory_space<vmem>>, vector<24x128xf32>
    %cst_7 = arith.constant dense<0.000000e+00> : vector<16x128xf32>
    %10 = tpu.matmul %8, %9, %cst_7 {dimension_numbers = #tpu.dot_dimension_numbers<[1], [0], [0], [1], [0, 0, 1, 1], [], []>} : vector<16x24xf32>, vector<24x128xf32>, vector<16x128xf32> -> vector<16x128xf32>
    %c0_8 = arith.constant 0 : index
    %c0_9 = arith.constant 0 : index
    %11 = vector.load %arg5[%c0_8, %c0_9] : memref<1x128xf32, #tpu.memory_space<vmem>>, vector<1x128xf32>
    %12 = vector.broadcast %11 : vector<1x128xf32> to vector<16x128xf32>
    %13 = arith.addf %10, %12 : vector<16x128xf32>
    %14 = arith.mulf %6, %7 : vector<16x128xf32>
    %15 = arith.addf %14, %13 : vector<16x128xf32>
    %c0_10 = arith.constant 0 : index
    %c0_11 = arith.constant 0 : index
    %16 = vector.load %arg6[%c0_10, %c0_11] : memref<16x128xf32, #tpu.memory_space<vmem>>, vector<16x128xf32>
    tpu.vector_store %arg6[%c0_10, %c0_11], %15 {strides = array<i32>} : memref<16x128xf32, #tpu.memory_space<vmem>>, vector<16x128xf32>,
    return
  }
  func.func @transform_0(%arg0: i32) -> (i32, i32) {
    %c0_i32 = arith.constant 0 : i32
    %c0_i32_0 = arith.constant 0 : i32
    return %arg0, %c0_i32 : i32, i32
  }
  func.func @transform_1(%arg0: i32) -> (i32, i32) {
    %c0_i32 = arith.constant 0 : i32
    %c0_i32_0 = arith.constant 0 : i32
    %c0_i32_1 = arith.constant 0 : i32
    return %c0_i32, %c0_i32_0 : i32, i32
  }
  func.func @transform_2(%arg0: i32) -> (i32, i32) {
    %c0_i32 = arith.constant 0 : i32
    %c0_i32_0 = arith.constant 0 : i32
    %c0_i32_1 = arith.constant 0 : i32
    return %c0_i32, %c0_i32_0 : i32, i32
  }
  func.func @transform_3(%arg0: i32) -> (i32, i32) {
    %c0_i32 = arith.constant 0 : i32
    %c0_i32_0 = arith.constant 0 : i32
    %c0_i32_1 = arith.constant 0 : i32
    return %c0_i32, %c0_i32_0 : i32, i32
  }
  func.func @transform_4(%arg0: i32) -> (i32, i32) {
    %c0_i32 = arith.constant 0 : i32
    %c0_i32_0 = arith.constant 0 : i32
    %c0_i32_1 = arith.constant 0 : i32
    return %c0_i32, %c0_i32_0 : i32, i32
  }
  func.func @transform_5(%arg0: i32) -> (i32, i32) {
    %c0_i32 = arith.constant 0 : i32
    %c0_i32_0 = arith.constant 0 : i32
    return %arg0, %c0_i32 : i32, i32
  }
}

</mosaic_0001>

<bundles_post_ra>
// kernel: _quadratic_impl.1
= control target key start
LH: loop header
LB: loop body
LE: loop exit
PB: predicated region body
PF: predicated region fallthrough
CT: control target
= control target key end

     0   :  { %10 = vsyncpa [#allocation3], 0  ;;  %s519_s0 = inlined_call_operand.hbm [shape: f32[16,24], index: 0, kind: input, shape index: {}]   ;;  %s520_s1 = inlined_call_operand.hbm [shape: f32[24,256], index: 1, kind: input, shape index: {}]   ;;  %s521_s2 = inlined_call_operand.hbm [shape: f32[24,128], index: 2, kind: input, shape index: {}]   ;;  %s522_s3 = inlined_call_operand.vmem [shape: f32[1,256], index: 3, kind: input, shape index: {}]   ;;  %s523_s4 = inlined_call_operand.vmem [shape: f32[1,128], index: 4, kind: input, shape index: {}]   ;;  %s524_s5 = inlined_call_operand.hbm [shape: f32[16,128], index: 5, kind: output, shape index: {}]  }
   0x1   :  { %11 = vsyncpa [#allocation6], 0 }
   0x2   :  { %12 = vsyncpa [#allocation4], 0  ;;  %s413_s18 = smov [#allocation5]   ;;  %s319_s22 = scalar_lea.hbm %s520_s1, 768 }
   0x3   :  { %s30_s19 = sshll.u32 %s413_s18, 4  ;;  %p320_p0 = scmp.ne.s32.totalorder %s520_s1, %s319_s22  ;;  %s31_s19 = int_to_ptr.vmem [resolvable:$true] %s30_s19 }
   0x4   :  { %p323_p1 = scmp.lt.u32.totalorder %s319_s22, %s520_s1 }
   0x6   :  { %p325_p2 = pnand %p323_p1, %p320_p0 }
   0x8   :  { %328 = shalt.err (!%p325_p2)
}
   0x9   :  { %s329_s27 = scalar_lea.vmem %s31_s19, 768  ;;  %p334_p4 = scmp.lt.s32.totalorder %s31_s19, %s31_s19 }
   0xa   :  { %p330_p3 = scmp.ne.s32.totalorder %s31_s19, %s329_s27  ;;  %p335_p5 = scmp.lt.s32.totalorder %s329_s27, %s329_s27 }
   0xc   :  { %p336_p6 = por %p335_p5, %p334_p4 }
   0xe   :  { %p337_p7 = pnand %p336_p6, %p330_p3 }
  0x10   :  { %340 = shalt.err (!%p337_p7)
}
  0x11   :  { %s414_s28 = smov 256   ;;  %s415_s29 = smov 16  }
  0x12   :  { %36 = dma.hbm_to_vmem [thread:$0]  %s520_s1, 768, %s31_s19, [#allocation6], %s414_s28, %s414_s28, %s415_s29  }
  0x13   :  { %s416_s7 = smov [#allocation2]   ;;  %s341_s11 = scalar_lea.hbm %s519_s0, 256 }
  0x14   :  { %s18_s8 = sshll.u32 %s416_s7, 4  ;;  %p342_p8 = scmp.ne.s32.totalorder %s519_s0, %s341_s11  ;;  %s19_s8 = int_to_ptr.vmem [resolvable:$true] %s18_s8 }
  0x15   :  { %p345_p9 = scmp.lt.u32.totalorder %s341_s11, %s519_s0 }
  0x17   :  { %p347_p10 = pnand %p345_p9, %p342_p8 }
  0x19   :  { %350 = shalt.err (!%p347_p10)
}
  0x1a   :  { %s351_s16 = scalar_lea.vmem %s19_s8, 256  ;;  %p356_p12 = scmp.lt.s32.totalorder %s19_s8, %s19_s8 }
  0x1b   :  { %p352_p11 = scmp.ne.s32.totalorder %s19_s8, %s351_s16  ;;  %p357_p13 = scmp.lt.s32.totalorder %s351_s16, %s351_s16 }
  0x1d   :  { %p358_p0 = por %p357_p13, %p356_p12 }
  0x1f   :  { %p359_p1 = pnand %p358_p0, %p352_p11 }
  0x21   :  { %362 = shalt.err (!%p359_p1)
}
  0x22   :  { %s417_s1 = smov 128   ;;  %s418_s17 = smov 8  }
  0x23   :  { %24 = dma.hbm_to_vmem [thread:$0]  %s519_s0, 256, %s19_s8, [#allocation3], %s417_s1, %s417_s1, %s418_s17  }
  0x24   :  { %s419_s20 = smov [#allocation7]   ;;  %s363_s24 = scalar_lea.hbm %s521_s2, 384 }
  0x25   :  { %s42_s21 = sshll.u32 %s419_s20, 4  ;;  %p364_p2 = scmp.ne.s32.totalorder %s521_s2, %s363_s24  ;;  %s43_s21 = int_to_ptr.vmem [resolvable:$true] %s42_s21 }
  0x26   :  { %p367_p3 = scmp.lt.u32.totalorder %s363_s24, %s521_s2 }
  0x28   :  { %p369_p4 = pnand %p367_p3, %p364_p2 }
  0x2a   :  { %372 = shalt.err (!%p369_p4)
}
  0x2b   :  { %s373_s29 = scalar_lea.vmem %s43_s21, 384  ;;  %p378_p6 = scmp.lt.s32.totalorder %s43_s21, %s43_s21 }
  0x2c   :  { %p374_p5 = scmp.ne.s32.totalorder %s43_s21, %s373_s29  ;;  %p379_p7 = scmp.lt.s32.totalorder %s373_s29, %s373_s29 }
  0x2e   :  { %p380_p8 = por %p379_p7, %p378_p6 }
  0x30   :  { %p381_p9 = pnand %p380_p8, %p374_p5 }
  0x32   :  { %384 = shalt.err (!%p381_p9)
}
  0x33   :  { %48 = dma.hbm_to_vmem [thread:$0]  %s521_s2, 384, %s43_s21, [#allocation6], %s417_s1, %s417_s1, %s418_s17  }
  0x34   :  { %407 = dma.done.wait [#allocation3], 256  }
  0x35   :  { %408 = vsyncadd [#allocation3], 4294967040 }
  0x36   :  { %409 = dma.done.wait [#allocation6], 1152  }
  0x37   :  { %410 = vsyncadd [#allocation6], 4294966144  ;;  %v420_v0 = vmov 0.0   ;;  %v65_v1 = vld [vmem:[#allocation5 + $0x8] sm:$0xff]  ;;  %v67_v2 = vld [vmem:[#allocation5 + $0x18] sm:$0xff]  ;;  %vm82_vm0 = vcmask 195584   ;;  %v72_v17 = vlaneseq }
  0x38   :  { %153 = vmatprep.mubr.f32.mxu0 %v420_v0  ;;  %v64_v3 = vld [vmem:[#allocation5] sm:$0xff]  ;;  %v302_v4 = vpack.c.bf16 %v67_v2, %v65_v1  ;;  %v66_v5 = vld [vmem:[#allocation5 + $0x10] sm:$0xff]  ;;  %v169_v7 = vld [vmem:[#allocation7 + $0x8] sm:$0xff] }
  0x39   :  { %v168_v6 = vld [vmem:[#allocation7] sm:$0xff]  ;;  %v304_v8 = vpack.c.bf16 %v66_v5, %v64_v3  ;;  %v69_v10 = vld [vmem:[#allocation5 + $0x28] sm:$0xff]  ;;  %v170_v12 = vld [vmem:[#allocation7 + $0x10] sm:$0xff]  ;;  %v73_v18 = vshrl.u32 %v72_v17, 7 }
  0x3a   :  { %v306_v9 = vpack.c.bf16 %v169_v7, %v168_v6  ;;  %v62_v11 = vld [vmem:[#allocation2] sm:$0xff]  ;;  %303 = vmatprep.subr.bf16.mxu0 %v302_v4  ;;  %v63_v14 = vld [vmem:[#allocation2 + $0x8] sm:$0xff]  ;;  %v68_v15 = vld [vmem:[#allocation5 + $0x20] sm:$0xff] }
  0x3b   :  { %v166_v13 = vmul.f32 %v62_v11, %v62_v11  ;;  %305 = vmatpush1.bf16.msra.mxu0 %v304_v8  ;;  %v167_v16 = vmul.f32 %v63_v14, %v63_v14  ;;  %v74_v19 = vsub.s32 0, %v73_v18  ;;  %v70_v20 = vld [vmem:[%s522_s3] sm:$0x3]  ;;  %v78_v21 = vsub.s32 1, %v73_v18  ;;  %s421_s3 = smov [#allocation8]  }
  0x3c   :  { %307 = vmatprep.subr.bf16.mxu1 %v306_v9  ;;  %93 = vmatprep.subr.mxu0 %v69_v10  ;;  %v285_v25 = vld [vmem:[%s523_s4] ss:$0 sm:$0xff]  ;;  %s270_s9 = sshll.u32 %s421_s3, 4  ;;  %s271_s9 = int_to_ptr.vmem [resolvable:$true] %s270_s9 }
  0x3d   :  { %309 = vmatpush3.bf16.msra.mxu1 %v306_v9  ;;  %299 = vmatprep.mubr.msk.f32.mxu1 %vm82_vm0, %v166_v13  ;;  %v75_v22 = vrot.slane %v70_v20, %v74_v19  ;;  %v79_v23 = vrot.slane %v70_v20, %v78_v21  ;;  %s385_s4 = scalar_lea.vmem %s271_s9, 256  ;;  %p390_p11 = scmp.lt.s32.totalorder %s271_s9, %s271_s9 }
  0x3e   :  { %297 = vmatprep.subr.mxu1 %v170_v12  ;;  %p386_p10 = scmp.ne.s32.totalorder %s271_s9, %s385_s4  ;;  %p391_p12 = scmp.lt.s32.totalorder %s385_s4, %s385_s4 }
  0x3f   :  { %94 = vmatpush1.msra.mxu0 %v68_v15 }
  0x40   :  { %283 = vmatmul.mubr.msk.f32.vlgmr.msra.gmra.mrb[0].mxu0 %vm82_vm0, %v62_v11  ;;  %p392_p13 = por %p391_p12, %p390_p11 }
  0x41   :  { %298 = vmatpush3.msra.mxu1 %v170_v12  ;;  %159 = vmatprep.mubr.f32.mxu0 %v420_v0 }
  0x42   :  { %300 = vmatmul.mubr.msk.f32.vlgmr.msra.gmra.mrb[0].mxu1 %vm82_vm0, %v167_v16  ;;  %p393_p0 = pnand %p392_p13, %p386_p10 }
  0x44   :  { %284 = vmatmul.mubr.msk.f32.gmra.mrb[2].mxu0 %vm82_vm0, %v63_v14 }
 0x113   :  { %v155_v24 = vpop.f32.mrb[0].mxu0 }
 0x114   :  { %v156_v26 = vadd.f32 %v155_v24, %v75_v22  ;;  %v157_v27 = vpop.f32.mrb[1].mxu0 }
 0x115   :  { %v301_v28 = vpop.f32.mrb[0].mxu1  ;;  %v158_v29 = vadd.f32 %v157_v27, %v79_v23 }
 0x116   :  { %v250_v30 = vpop.f32.mrb[1].mxu1  ;;  %v256_v36 = vadd.f32 %v301_v28, %v285_v25 }
 0x117   :  { %v251_v31 = vadd.f32 %v285_v25, %v250_v30  ;;  %v259_v32 = vmul.f32 %v158_v29, %v156_v26  ;;  %v161_v33 = vpop.f32.mrb[2].mxu0 }
 0x118   :  { %v162_v34 = vadd.f32 %v161_v33, %v75_v22  ;;  %v163_v35 = vpop.f32.mrb[3].mxu0 }
 0x119   :  { %v261_v37 = vadd.f32 %v259_v32, %v251_v31  ;;  %v164_v38 = vadd.f32 %v163_v35, %v79_v23 }
 0x11b   :  { %263 = vst [vmem:[#allocation8] sm:$0xff] %v261_v37  ;;  %v260_v39 = vmul.f32 %v164_v38, %v162_v34 }
 0x11d   :  { %v262_v40 = vadd.f32 %v260_v39, %v256_v36 }
 0x11f   :  { %264 = vst [vmem:[#allocation8 + $0x8] sm:$0xff] %v262_v40 }
 0x120   :  { %396 = shalt.err (!%p393_p0)
}
 0x121   :  { %s397_s12 = scalar_lea.hbm %s524_s5, 256 }
 0x122   :  { %p398_p1 = scmp.ne.s32.totalorder %s524_s5, %s397_s12  ;;  %p401_p2 = scmp.lt.u32.totalorder %s397_s12, %s524_s5 }
 0x124   :  { %p403_p3 = pnand %p401_p2, %p398_p1 }
 0x126   :  { %406 = shalt.err (!%p403_p3)
}
 0x127   :  { %276 = dma.vmem_to_hbm [thread:$0]  %s271_s9, 256, %s524_s5, [#allocation4], %s417_s1, %s417_s1, %s418_s17  }
 0x128   :  { %411 = dma.done.wait [#allocation4], 256  }
 0x129   :  { %412 = vsyncadd [#allocation4], 4294967040 }
 0x12a   :  { %280 = vsyncpa [#allocation3], 1 }
 0x12b   :  { %281 = vsyncpa [#allocation6], 1 }
 0x12c   :  { %282 = vsyncpa [#allocation4], 1 }

// kernel: _quadratic_impl.1
= control target key start
LH: loop header
LB: loop body
LE: loop exit
PB: predicated region body
PF: predicated region fallthrough
CT: control target
= control target key end

     0   :  { %10 = vsyncpa [#allocation3], 0  ;;  %s519_s0 = inlined_call_operand.hbm [shape: f32[16,24], index: 0, kind: input, shape index: {}]   ;;  %s520_s1 = inlined_call_operand.hbm [shape: f32[24,256], index: 1, kind: input, shape index: {}]   ;;  %s521_s2 = inlined_call_operand.hbm [shape: f32[24,128], index: 2, kind: input, shape index: {}]   ;;  %s522_s3 = inlined_call_operand.vmem [shape: f32[1,256], index: 3, kind: input, shape index: {}]   ;;  %s523_s4 = inlined_call_operand.vmem [shape: f32[1,128], index: 4, kind: input, shape index: {}]   ;;  %s524_s5 = inlined_call_operand.hbm [shape: f32[16,128], index: 5, kind: output, shape index: {}]  }
   0x1   :  { %11 = vsyncpa [#allocation6], 0 }
   0x2   :  { %12 = vsyncpa [#allocation4], 0  ;;  %s413_s18 = smov [#allocation5]   ;;  %s319_s22 = scalar_lea.hbm %s520_s1, 768 }
   0x3   :  { %s30_s19 = sshll.u32 %s413_s18, 4  ;;  %p320_p0 = scmp.ne.s32.totalorder %s520_s1, %s319_s22  ;;  %s31_s19 = int_to_ptr.vmem [resolvable:$true] %s30_s19 }
   0x4   :  { %p323_p1 = scmp.lt.u32.totalorder %s319_s22, %s520_s1 }
   0x6   :  { %p325_p2 = pnand %p323_p1, %p320_p0 }
   0x8   :  { %328 = shalt.err (!%p325_p2)
}
   0x9   :  { %s329_s27 = scalar_lea.vmem %s31_s19, 768  ;;  %p334_p4 = scmp.lt.s32.totalorder %s31_s19, %s31_s19 }
   0xa   :  { %p330_p3 = scmp.ne.s32.totalorder %s31_s19, %s329_s27  ;;  %p335_p5 = scmp.lt.s32.totalorder %s329_s27, %s329_s27 }
   0xc   :  { %p336_p6 = por %p335_p5, %p334_p4 }
   0xe   :  { %p337_p7 = pnand %p336_p6, %p330_p3 }
  0x10   :  { %340 = shalt.err (!%p337_p7)
}
  0x11   :  { %s414_s28 = smov 256   ;;  %s415_s29 = smov 16  }
  0x12   :  { %36 = dma.hbm_to_vmem [thread:$0]  %s520_s1, 768, %s31_s19, [#allocation6], %s414_s28, %s414_s28, %s415_s29  }
  0x13   :  { %s416_s7 = smov [#allocation2]   ;;  %s341_s11 = scalar_lea.hbm %s519_s0, 256 }
  0x14   :  { %s18_s8 = sshll.u32 %s416_s7, 4  ;;  %p342_p8 = scmp.ne.s32.totalorder %s519_s0, %s341_s11  ;;  %s19_s8 = int_to_ptr.vmem [resolvable:$true] %s18_s8 }
  0x15   :  { %p345_p9 = scmp.lt.u32.totalorder %s341_s11, %s519_s0 }
  0x17   :  { %p347_p10 = pnand %p345_p9, %p342_p8 }
  0x19   :  { %350 = shalt.err (!%p347_p10)
}
  0x1a   :  { %s351_s16 = scalar_lea.vmem %s19_s8, 256  ;;  %p356_p12 = scmp.lt.s32.totalorder %s19_s8, %s19_s8 }
  0x1b   :  { %p352_p11 = scmp.ne.s32.totalorder %s19_s8, %s351_s16  ;;  %p357_p13 = scmp.lt.s32.totalorder %s351_s16, %s351_s16 }
  0x1d   :  { %p358_p0 = por %p357_p13, %p356_p12 }
  0x1f   :  { %p359_p1 = pnand %p358_p0, %p352_p11 }
  0x21   :  { %362 = shalt.err (!%p359_p1)
}
  0x22   :  { %s417_s1 = smov 128   ;;  %s418_s17 = smov 8  }
  0x23   :  { %24 = dma.hbm_to_vmem [thread:$0]  %s519_s0, 256, %s19_s8, [#allocation3], %s417_s1, %s417_s1, %s418_s17  }
  0x24   :  { %s419_s20 = smov [#allocation7]   ;;  %s363_s24 = scalar_lea.hbm %s521_s2, 384 }
  0x25   :  { %s42_s21 = sshll.u32 %s419_s20, 4  ;;  %p364_p2 = scmp.ne.s32.totalorder %s521_s2, %s363_s24  ;;  %s43_s21 = int_to_ptr.vmem [resolvable:$true] %s42_s21 }
  0x26   :  { %p367_p3 = scmp.lt.u32.totalorder %s363_s24, %s521_s2 }
  0x28   :  { %p369_p4 = pnand %p367_p3, %p364_p2 }
  0x2a   :  { %372 = shalt.err (!%p369_p4)
}
  0x2b   :  { %s373_s29 = scalar_lea.vmem %s43_s21, 384  ;;  %p378_p6 = scmp.lt.s32.totalorder %s43_s21, %s43_s21 }
  0x2c   :  { %p374_p5 = scmp.ne.s32.totalorder %s43_s21, %s373_s29  ;;  %p379_p7 = scmp.lt.s32.totalorder %s373_s29, %s373_s29 }
  0x2e   :  { %p380_p8 = por %p379_p7, %p378_p6 }
  0x30   :  { %p381_p9 = pnand %p380_p8, %p374_p5 }
  0x32   :  { %384 = shalt.err (!%p381_p9)
}
  0x33   :  { %48 = dma.hbm_to_vmem [thread:$0]  %s521_s2, 384, %s43_s21, [#allocation6], %s417_s1, %s417_s1, %s418_s17  }
  0x34   :  { %407 = dma.done.wait [#allocation3], 256  }
  0x35   :  { %408 = vsyncadd [#allocation3], 4294967040 }
  0x36   :  { %409 = dma.done.wait [#allocation6], 1152  }
  0x37   :  { %410 = vsyncadd [#allocation6], 4294966144  ;;  %v420_v0 = vmov 0.0   ;;  %v65_v1 = vld [vmem:[#allocation5 + $0x8] sm:$0xff]  ;;  %v67_v2 = vld [vmem:[#allocation5 + $0x18] sm:$0xff]  ;;  %vm82_vm0 = vcmask 195584   ;;  %v72_v17 = vlaneseq }
  0x38   :  { %153 = vmatprep.mubr.f32.mxu0 %v420_v0  ;;  %v64_v3 = vld [vmem:[#allocation5] sm:$0xff]  ;;  %v302_v4 = vpack.c.bf16 %v67_v2, %v65_v1  ;;  %v66_v5 = vld [vmem:[#allocation5 + $0x10] sm:$0xff]  ;;  %v169_v7 = vld [vmem:[#allocation7 + $0x8] sm:$0xff] }
  0x39   :  { %v168_v6 = vld [vmem:[#allocation7] sm:$0xff]  ;;  %v304_v8 = vpack.c.bf16 %v66_v5, %v64_v3  ;;  %v69_v10 = vld [vmem:[#allocation5 + $0x28] sm:$0xff]  ;;  %v170_v12 = vld [vmem:[#allocation7 + $0x10] sm:$0xff]  ;;  %v73_v18 = vshrl.u32 %v72_v17, 7 }
  0x3a   :  { %v306_v9 = vpack.c.bf16 %v169_v7, %v168_v6  ;;  %v62_v11 = vld [vmem:[#allocation2] sm:$0xff]  ;;  %303 = vmatprep.subr.bf16.mxu0 %v302_v4  ;;  %v63_v14 = vld [vmem:[#allocation2 + $0x8] sm:$0xff]  ;;  %v68_v15 = vld [vmem:[#allocation5 + $0x20] sm:$0xff] }
  0x3b   :  { %v166_v13 = vmul.f32 %v62_v11, %v62_v11  ;;  %305 = vmatpush1.bf16.msra.mxu0 %v304_v8  ;;  %v167_v16 = vmul.f32 %v63_v14, %v63_v14  ;;  %v74_v19 = vsub.s32 0, %v73_v18  ;;  %v70_v20 = vld [vmem:[%s522_s3] sm:$0x3]  ;;  %v78_v21 = vsub.s32 1, %v73_v18  ;;  %s421_s3 = smov [#allocation8]  }
  0x3c   :  { %307 = vmatprep.subr.bf16.mxu1 %v306_v9  ;;  %93 = vmatprep.subr.mxu0 %v69_v10  ;;  %v285_v25 = vld [vmem:[%s523_s4] ss:$0 sm:$0xff]  ;;  %s270_s9 = sshll.u32 %s421_s3, 4  ;;  %s271_s9 = int_to_ptr.vmem [resolvable:$true] %s270_s9 }
  0x3d   :  { %309 = vmatpush3.bf16.msra.mxu1 %v306_v9  ;;  %299 = vmatprep.mubr.msk.f32.mxu1 %vm82_vm0, %v166_v13  ;;  %v75_v22 = vrot.slane %v70_v20, %v74_v19  ;;  %v79_v23 = vrot.slane %v70_v20, %v78_v21  ;;  %s385_s4 = scalar_lea.vmem %s271_s9, 256  ;;  %p390_p11 = scmp.lt.s32.totalorder %s271_s9, %s271_s9 }
  0x3e   :  { %297 = vmatprep.subr.mxu1 %v170_v12  ;;  %p386_p10 = scmp.ne.s32.totalorder %s271_s9, %s385_s4  ;;  %p391_p12 = scmp.lt.s32.totalorder %s385_s4, %s385_s4 }
  0x3f   :  { %94 = vmatpush1.msra.mxu0 %v68_v15 }
  0x40   :  { %283 = vmatmul.mubr.msk.f32.vlgmr.msra.gmra.mrb[0].mxu0 %vm82_vm0, %v62_v11  ;;  %p392_p13 = por %p391_p12, %p390_p11 }
  0x41   :  { %298 = vmatpush3.msra.mxu1 %v170_v12  ;;  %159 = vmatprep.mubr.f32.mxu0 %v420_v0 }
  0x42   :  { %300 = vmatmul.mubr.msk.f32.vlgmr.msra.gmra.mrb[0].mxu1 %vm82_vm0, %v167_v16  ;;  %p393_p0 = pnand %p392_p13, %p386_p10 }
  0x44   :  { %284 = vmatmul.mubr.msk.f32.gmra.mrb[2].mxu0 %vm82_vm0, %v63_v14 }
 0x113   :  { %v155_v24 = vpop.f32.mrb[0].mxu0 }
 0x114   :  { %v156_v26 = vadd.f32 %v155_v24, %v75_v22  ;;  %v157_v27 = vpop.f32.mrb[1].mxu0 }
 0x115   :  { %v301_v28 = vpop.f32.mrb[0].mxu1  ;;  %v158_v29 = vadd.f32 %v157_v27, %v79_v23 }
 0x116   :  { %v250_v30 = vpop.f32.mrb[1].mxu1  ;;  %v256_v36 = vadd.f32 %v301_v28, %v285_v25 }
 0x117   :  { %v251_v31 = vadd.f32 %v285_v25, %v250_v30  ;;  %v259_v32 = vmul.f32 %v158_v29, %v156_v26  ;;  %v161_v33 = vpop.f32.mrb[2].mxu0 }
 0x118   :  { %v162_v34 = vadd.f32 %v161_v33, %v75_v22  ;;  %v163_v35 = vpop.f32.mrb[3].mxu0 }
 0x119   :  { %v261_v37 = vadd.f32 %v259_v32, %v251_v31  ;;  %v164_v38 = vadd.f32 %v163_v35, %v79_v23 }
 0x11b   :  { %263 = vst [vmem:[#allocation8] sm:$0xff] %v261_v37  ;;  %v260_v39 = vmul.f32 %v164_v38, %v162_v34 }
 0x11d   :  { %v262_v40 = vadd.f32 %v260_v39, %v256_v36 }
 0x11f   :  { %264 = vst [vmem:[#allocation8 + $0x8] sm:$0xff] %v262_v40 }
 0x120   :  { %396 = shalt.err (!%p393_p0)
}
 0x121   :  { %s397_s12 = scalar_lea.hbm %s524_s5, 256 }
 0x122   :  { %p398_p1 = scmp.ne.s32.totalorder %s524_s5, %s397_s12  ;;  %p401_p2 = scmp.lt.u32.totalorder %s397_s12, %s524_s5 }
 0x124   :  { %p403_p3 = pnand %p401_p2, %p398_p1 }
 0x126   :  { %406 = shalt.err (!%p403_p3)
}
 0x127   :  { %276 = dma.vmem_to_hbm [thread:$0]  %s271_s9, 256, %s524_s5, [#allocation4], %s417_s1, %s417_s1, %s418_s17  }
 0x128   :  { %411 = dma.done.wait [#allocation4], 256  }
 0x129   :  { %412 = vsyncadd [#allocation4], 4294967040 }
 0x12a   :  { %280 = vsyncpa [#allocation3], 1 }
 0x12b   :  { %281 = vsyncpa [#allocation6], 1 }
 0x12c   :  { %282 = vsyncpa [#allocation4], 1 }

</bundles_post_ra>
